<compile_context>
chip_gen: v6e
topology: v6e:2x2x1
jax: 0.10.0
libtpu: 0.0.40
codegen_flags: <defaults>
</compile_context>

<pallas_src>
import functools

import jax
import jax.numpy as jnp
from jax.experimental import pallas as pl
from jax.experimental.pallas import tpu as pltpu

LANES = 128
TARGET_TILE_BYTES = 2 * 1024 * 1024   # per-input, per-grid-step tile size


def _cdiv(a, b):
    return -(-a // b)


def _round_up(a, m):
    return _cdiv(a, m) * m


def _charbonnier_kernel(x_ref, y_ref, out_ref, *, eps, rows, block_rows,
                        need_row_mask):
    x = x_ref[...].astype(jnp.float32)
    y = y_ref[...].astype(jnp.float32)
    diff = x - y
    val = jnp.sqrt(diff * diff + jnp.float32(eps) * jnp.float32(eps))

    def _full_sum():
        # Reduce only over the sublane axis -> lane-dense (1, 1, 128) partial.
        out_ref[...] = jnp.sum(val, axis=0).reshape(1, 1, val.shape[1])

    if not need_row_mask:
        # rows % block_rows == 0: every block is full, no masking anywhere.
        _full_sum()
    else:
        i = pl.program_id(0)
        valid = rows - i * block_rows        # valid rows in this block

        @pl.when(valid >= block_rows)        # all full blocks: unmasked path
        def _():
            _full_sum()

        @pl.when(valid < block_rows)         # only the tail block pays this
        def _():
            row_idx = jax.lax.broadcasted_iota(jnp.int32, val.shape, 0)
            masked = jnp.where(row_idx < valid, val, jnp.float32(0.0))
            out_ref[...] = jnp.sum(masked, axis=0).reshape(1, 1, val.shape[1])


def _charbonnier_sum_2d(x2, y2, eps, rows, block_rows, num_blocks):
    need_row_mask = (rows % block_rows) != 0
    kernel = functools.partial(
        _charbonnier_kernel, eps=eps, rows=rows, block_rows=block_rows,
        need_row_mask=need_row_mask)

    partials = pl.pallas_call(
        kernel,
        out_shape=jax.ShapeDtypeStruct((num_blocks, 1, LANES), jnp.float32),
        grid_spec=pltpu.PrefetchScalarGridSpec(
            num_scalar_prefetch=0,
            grid=(num_blocks,),
            in_specs=[
                pl.BlockSpec((block_rows, LANES), lambda i: (i, 0)),
                pl.BlockSpec((block_rows, LANES), lambda i: (i, 0)),
            ],
            out_specs=pl.BlockSpec((1, 1, LANES), lambda i: (i, 0, 0)),
        ),
        compiler_params=pltpu.CompilerParams(
            dimension_semantics=("parallel",),
        ),
    )(x2, y2)
    return jnp.sum(partials)


def charbonnier_loss(x, y, eps=1e-3):
    assert x.shape == y.shape, (x.shape, y.shape)
    assert x.dtype == y.dtype, (x.dtype, y.dtype)
    total = int(x.size)
    eps = float(eps)

    # Row-major flatten: same element order as torch's contiguous flatten.
    xf = jnp.ravel(x)
    yf = jnp.ravel(y)

    rem = total % LANES
    main = total - rem
    rows = main // LANES

    total_sum = jnp.float32(0.0)

    if rows > 0:
        # Keep bytes-per-step ~= TARGET_TILE_BYTES regardless of dtype width
        # (bf16 gets 2x the rows of f32 so per-step overhead stays amortized).
        itemsize = jnp.dtype(x.dtype).itemsize
        max_block_rows = max(8, TARGET_TILE_BYTES // (LANES * itemsize))

        if rows <= 8:
            block_rows = rows                 # single tiny block (full dim)
        else:
            nb = max(2, _cdiv(rows, max_block_rows))
            if nb % 2 and nb <= 16:
                nb += 1                       # even block count -> balanced
                                              # split across v7x's 2 TCs
            block_rows = min(max_block_rows, _round_up(_cdiv(rows, nb), 8))
        num_blocks = _cdiv(rows, block_rows)

        x2 = (xf if rem == 0 else xf[:main]).reshape(rows, LANES)
        y2 = (yf if rem == 0 else yf[:main]).reshape(rows, LANES)
        total_sum = total_sum + _charbonnier_sum_2d(
            x2, y2, eps, rows, block_rows, num_blocks)

    if rem:
        # TODO(synk): when total % 128 != 0 the xf[:main] slice above still
        # materializes a copy of the bulk; avoiding it needs manual 1-D DMA.
        xt = xf[main:].astype(jnp.float32)
        yt = yf[main:].astype(jnp.float32)
        d = xt - yt
        total_sum = total_sum + jnp.sum(
            jnp.sqrt(d * d + jnp.float32(eps) * jnp.float32(eps)))

    return total_sum / jnp.float32(total)


if __name__ == "__main__":
    key = jax.random.PRNGKey(0)

    def ref_loss(a, b, eps=1e-3):
        d = a.astype(jnp.float32) - b.astype(jnp.float32)
        return jnp.mean(jnp.sqrt(d * d + jnp.float32(eps) * jnp.float32(eps)))

    # Primary case: NCHW inputs, like the PyTorch module would receive.
    kx, ky = jax.random.split(key)
    x = jax.random.normal(kx, (2, 4, 16, 16), dtype=jnp.float32)
    y = jax.random.normal(ky, (2, 4, 16, 16), dtype=jnp.float32)
    loss = jax.block_until_ready(charbonnier_loss(x, y, eps=1e-3))
    want = ref_loss(x, y)
    assert jnp.allclose(loss, want, rtol=1e-4, atol=1e-6), (loss, want)

    # Extra coverage:
    #  (2, 3, 5, 7)     -> total % 128 != 0: kernel bulk + plain-jnp tail.
    #  (5, 4, 128)      -> ragged last row-block: @pl.when masked tail path.
    #  (2, 4, 136, 128) -> larger input, even 2-block split, no ragged rows.
    #  bf16             -> dtype-scaled block_rows path.
    for shape, dtype in [((2, 3, 5, 7), jnp.float32),
                         ((5, 4, 128), jnp.float32),
                         ((2, 4, 136, 128), jnp.float32),
                         ((2, 4, 16, 16), jnp.bfloat16)]:
        kx, ky, key = jax.random.split(key, 3)
        xa = jax.random.normal(kx, shape, dtype=jnp.float32).astype(dtype)
        ya = jax.random.normal(ky, shape, dtype=jnp.float32).astype(dtype)
        got = jax.block_until_ready(charbonnier_loss(xa, ya, eps=1e-3))
        exp = ref_loss(xa, ya)
        assert jnp.allclose(got, exp, rtol=1e-4, atol=1e-6), (shape, got, exp)

    print("KERNEL_OK")
</pallas_src>

<mosaic_0001>
module attributes {stable_mosaic.version = 11 : i64} {
  func.func @_charbonnier_kernel(%arg0: i32, %arg1: memref<8x128xf32, #tpu.memory_space<vmem>>, %arg2: memref<8x128xf32, #tpu.memory_space<vmem>>, %arg3: memref<1x1x128xf32, #tpu.memory_space<vmem>>) attributes {dimension_semantics = [#tpu.dimension_semantics<parallel>], iteration_bounds = array<i64: 2>, scalar_prefetch = 0 : i64, scratch_operands = 0 : i64, tpu.core_type = #tpu.core_type<tc>, window_params = [{transform_indices = @transform_0, window_bounds = array<i64: 8, 128>}, {transform_indices = @transform_1, window_bounds = array<i64: 8, 128>}, {transform_indices = @transform_2, window_bounds = array<i64: 1, 1, 128>}]} {
    %c0 = arith.constant 0 : index
    %c0_0 = arith.constant 0 : index
    %0 = vector.load %arg1[%c0, %c0_0] : memref<8x128xf32, #tpu.memory_space<vmem>>, vector<8x128xf32>
    %c0_1 = arith.constant 0 : index
    %c0_2 = arith.constant 0 : index
    %1 = vector.load %arg2[%c0_1, %c0_2] : memref<8x128xf32, #tpu.memory_space<vmem>>, vector<8x128xf32>
    %2 = arith.subf %0, %1 : vector<8x128xf32>
    %3 = arith.mulf %2, %2 : vector<8x128xf32>
    %cst = arith.constant 1.000000e-03 : f32
    %cst_3 = arith.constant 1.000000e-03 : f32
    %4 = arith.mulf %cst, %cst_3 : f32
    %5 = vector.broadcast %4 : f32 to vector<8x128xf32>
    %6 = arith.addf %3, %5 : vector<8x128xf32>
    %7 = math.sqrt %6 : vector<8x128xf32>
    %cst_4 = arith.constant dense<0.000000e+00> : vector<128xf32>
    %8 = vector.multi_reduction <add>, %7, %cst_4 [0] : vector<8x128xf32> to vector<128xf32>
    %9 = vector.shape_cast %8 : vector<128xf32> to vector<1x1x128xf32>
    %c0_5 = arith.constant 0 : index
    %c0_6 = arith.constant 0 : index
    %c0_7 = arith.constant 0 : index
    %10 = vector.load %arg3[%c0_5, %c0_6, %c0_7] : memref<1x1x128xf32, #tpu.memory_space<vmem>>, vector<1x1x128xf32>
    tpu.vector_store %arg3[%c0_5, %c0_6, %c0_7], %9 {strides = array<i32>} : memref<1x1x128xf32, #tpu.memory_space<vmem>>, vector<1x1x128xf32>,
    return
  }
  func.func @transform_0(%arg0: i32) -> (i32, i32) {
    %c0_i32 = arith.constant 0 : i32
    %c0_i32_0 = arith.constant 0 : i32
    return %arg0, %c0_i32 : i32, i32
  }
  func.func @transform_1(%arg0: i32) -> (i32, i32) {
    %c0_i32 = arith.constant 0 : i32
    %c0_i32_0 = arith.constant 0 : i32
    return %arg0, %c0_i32 : i32, i32
  }
  func.func @transform_2(%arg0: i32) -> (i32, i32, i32) {
    %c0_i32 = arith.constant 0 : i32
    %c0_i32_0 = arith.constant 0 : i32
    %c0_i32_1 = arith.constant 0 : i32
    return %arg0, %c0_i32, %c0_i32_0 : i32, i32, i32
  }
}

</mosaic_0001>

<bundles_post_ra>
// kernel: tpu_custom_call.1
= control target key start
LH: loop header
LB: loop body
LE: loop exit
PB: predicated region body
PF: predicated region fallthrough
CT: control target
= control target key end

     0   :  { %7 = vsyncpa [#allocation3], 0  ;;  %s721_s0 = inlined_call_operand.hbm [shape: f32[16,128], index: 0, kind: input, shape index: {}]   ;;  %s722_s1 = inlined_call_operand.hbm [shape: f32[16,128], index: 1, kind: input, shape index: {}]   ;;  %s723_s2 = inlined_call_operand.hbm [shape: f32[2,1,128], index: 2, kind: output, shape index: {}]  }
   0x1   :  { %9 = vsyncpa [#allocation3 + $0x1], 0 }
   0x2   :  { %10 = vsyncpa [#allocation6], 0 }
   0x3   :  { %12 = vsyncpa [#allocation6 + $0x1], 0 }
   0x4   :  { %13 = vsyncpa [#allocation4], 0 }
   0x5   :  { %15 = vsyncpa [#allocation4 + $0x1], 0  ;;  %s526_s9 = smov 0   ;;  %s528_s10 = smov 0  }
   0x6   :  { %s530_s11 = smov 0   ;;  %s532_s12 = smov 0  }
   0x7 LB: > { %s547_s13 = sadd.s32 4294967295, %s506_s12   ;;  %s316_s14 = sadd.s32 4294967294, %s506_s12   ;;  %s506_s12 = sphi %s532_s12, %s742_s12   ;;  %s502_s11 = sphi %s530_s11, %s741_s11   ;;  %s498_s10 = sphi %s528_s10, %s740_s10   ;;  %s494_s9 = sphi %s526_s9, %s739_s9  }
   0x8   : > { %s551_s15 = sadd.s32 1, %s506_s12   ;;  %s28_s16 = sadd.s32 1, %s502_s11 }
   0x9   : > { %s25_s17 = ssub.s32 %s506_s12, %s551_s15  ;;  %p35_p0 = scmp.ne.s32.totalorder %s502_s11, %s498_s10 }
   0xa   : > { %p26_p1 = scmp.eq.s32.totalorder %s25_s17, 0  ;;  %p36_p2 = scmp.eq.s32.totalorder %s506_s12, 0 }
   0xb   : > { %p41_p3 = scmp.ne.s32.totalorder %s498_s10, %s494_s9  ;;  %p42_p4 = scmp.eq.s32.totalorder %s547_s13, 0 }
   0xc   : > { %s563_s18 = scalar_select %p26_p1, %s502_s11, %s28_s16  }
   0xd   : > { %p565_p5 = por %p36_p2, %p35_p0  ;;  %p569_p6 = por %p42_p4, %p41_p3 }
   0xe   : > { %p91_p7 = scmp.eq.s32.totalorder %s547_s13, 1  ;;  %p97_p8 = scmp.eq.s32.totalorder %s316_s14, 1 }
   0xf   : > { %s727_s20 = scalar_select %p569_p6, 1, 0 }
  0x10   : > { %p346_p10 = scmp.lt.s32.totalorder %s506_s12, 2  ;;  %p576_p11 = por %p91_p7, %p35_p0 }
  0x11   : > { %p580_p12 = por %p97_p8, %p41_p3  ;;  %s585_s23 = sand.u32 1, %s502_s11  }
  0x12   : > { %s728_s21 = scalar_select %p576_p11, 1, 0 }
  0x13   : > { %s729_s22 = scalar_select %p580_p12, 1, 0 }
  0x14   : > { %s320_s24 = sshll.u32 %s506_s12, 7  ;;  %s319_s25 = sshll.u32 %s585_s23, 3 }
  0x15   : > { %s594_s28 = scalar_lea.hbm %s721_s0, %s320_s24  ;;  %s121_s29 = scalar_lea.vmem [#allocation2], %s319_s25 }
  0x16   : > { %s128_s30 = sshll.u32 %s121_s29, 4  ;;  %p600_p13 = pnand %p346_p10, %p565_p5  ;;  %s604_s30 = int_to_ptr.vmem [resolvable:$true] %s128_s30 }
  0x17   : > { %s118_s4 = scalar_lea.sflag [#allocation3], %s585_s23  ;;  %s382_s5 = scalar_lea.hbm %s594_s28, 128 }
  0x18   : > { %p383_p2 = scmp.ne.s32.totalorder %s594_s28, %s382_s5  ;;  %p384_p3 = pneg %p600_p13 }
  0x19   : > { %s387_s8 = scalar_lea.hbm %s721_s0, 256  ;;  %p388_p5 = scmp.lt.s32.totalorder %s594_s28, %s721_s0 }
  0x1a   : > { %p385_p4 = pnand %p384_p3, %p383_p2  ;;  %p389_p8 = scmp.lt.s32.totalorder %s387_s8, %s382_s5 }
  0x1c   : > { %p386_p7 = pneg %p385_p4  ;;  %p390_p10 = por %p389_p8, %p388_p5 }
  0x1e   : > { %p391_p9 = pnand %p390_p10, %p386_p7 }
  0x20   : > { %394 = shalt.err (!%p391_p9)
}
  0x21   : > { %s395_s17 = scalar_lea.vmem %s604_s30, 128  ;;  %s508_s19 = smov [#allocation2]  }
  0x22   : > { %p396_p0 = scmp.ne.s32.totalorder %s604_s30, %s395_s17  ;;  %s400_s26 = sshll.u32 %s508_s19, 4  ;;  %s401_s26 = int_to_ptr.vmem [resolvable:$false] %s400_s26 }
  0x23   : > { %s402_s27 = scalar_lea.vmem %s401_s26, 256  ;;  %p403_p1 = scmp.lt.s32.totalorder %s604_s30, %s401_s26 }
  0x24   : > { %p398_p2 = pnand %p396_p0, %p384_p3  ;;  %p404_p12 = scmp.lt.s32.totalorder %s402_s27, %s395_s17 }
  0x26   : > { %p399_p4 = pneg %p398_p2  ;;  %p405_p11 = por %p404_p12, %p403_p1 }
  0x28   : > { %p406_p5 = pnand %p405_p11, %p399_p4 }
  0x2a   : > { %409 = shalt.err (!%p406_p5)
}
  0x2b   : > { %338 = dma.hbm_to_vmem [thread:$0]  (!%p600_p13), %s594_s28, 128, %s604_s30, %s118_s4  }
  0x2c   : > { %p731_p9 = scmp.lt.s32.totalorder %s506_s12, 3  ;;  %p732_p0 = scmp.ge.s32.totalorder %s506_s12, 1 }
  0x2d   : > { %s646_s7 = scalar_lea.hbm %s722_s1, %s320_s24  ;;  %s139_s8 = scalar_lea.vmem [#allocation5], %s319_s25 }
  0x2e   : > { %p637_p7 = pnand %p732_p0, %p731_p9  ;;  %s146_s14 = sshll.u32 %s139_s8, 4  ;;  %s147_s14 = int_to_ptr.vmem [resolvable:$true] %s146_s14 }
  0x2f   : > { %s136_s28 = scalar_lea.sflag [#allocation6], %s585_s23  ;;  %s410_s30 = scalar_lea.hbm %s646_s7, 128 }
  0x30   : > { %s733_s29 = scalar_select %p637_p7, 1, 0 }
  0x31   : > { %p411_p11 = scmp.ne.s32.totalorder %s646_s7, %s410_s30  ;;  %s415_s17 = scalar_lea.hbm %s722_s1, 256 }
  0x32   : > { %p416_p8 = scmp.lt.s32.totalorder %s646_s7, %s722_s1  ;;  %p417_p10 = scmp.lt.s32.totalorder %s415_s17, %s410_s30 }
  0x33   : > { %p413_p12 = pnand %p411_p11, %p384_p3 }
  0x34   : > { %p418_p2 = por %p417_p10, %p416_p8 }
  0x35   : > { %p414_p1 = pneg %p413_p12 }
  0x37   : > { %p419_p4 = pnand %p418_p2, %p414_p1 }
  0x39   : > { %422 = shalt.err (!%p419_p4)
}
  0x3a   : > { %s423_s25 = scalar_lea.vmem %s147_s14, 128  ;;  %s509_s23 = smov [#allocation5]  }
  0x3b   : > { %p424_p5 = scmp.ne.s32.totalorder %s147_s14, %s423_s25  ;;  %s428_s26 = sshll.u32 %s509_s23, 4  ;;  %s429_s26 = int_to_ptr.vmem [resolvable:$false] %s428_s26 }
  0x3c   : > { %s430_s27 = scalar_lea.vmem %s429_s26, 256  ;;  %p431_p11 = scmp.lt.s32.totalorder %s147_s14, %s429_s26 }
  0x3d   : > { %p426_p9 = pnand %p424_p5, %p384_p3  ;;  %p432_p12 = scmp.lt.s32.totalorder %s430_s27, %s423_s25 }
  0x3f   : > { %p427_p0 = pneg %p426_p9  ;;  %p433_p6 = por %p432_p12, %p431_p11 }
  0x41   : > { %p434_p7 = pnand %p433_p6, %p427_p0 }
  0x43   : > { %437 = shalt.err (!%p434_p7)
}
  0x44   : > { %341 = dma.hbm_to_vmem [thread:$0]  (!%p600_p13), %s646_s7, 128, %s147_s14, %s136_s28  }
  0x45   : > { %p734_p1 = scmp.ne.s32.totalorder %s733_s29, 0 }
  0x46   : > { %s672_s5 = sand.u32 (!%p734_p1), 1, %s498_s10   ;;  %p735_p3 = scmp.ne.s32.totalorder (!%p734_p1), %s727_s20, 0 }
  0x47   : > { %155 = sbr.rel (%p734_p1) target bundleno = 129 (0x81), region = 28  ;;  %s324_s6 = sshll.u32 (!%p734_p1), %s672_s5, 3 }
  0x48   : > { %s158_s8 = scalar_lea.sflag (!%p734_p1), [#allocation3], %s672_s5  ;;  %s161_s30 = scalar_lea.vmem (!%p734_p1), [#allocation2], %s324_s6 }
  0x4c   : > { %481 = dma.done.wait (%p735_p3), %s158_s8, 128  }
  0x4d   : > { %483 = vsyncadd (%p735_p3), %s158_s8, 4294967168  ;;  %s167_s3 = scalar_lea.sflag [#allocation6], %s672_s5  ;;  %s170_s7 = scalar_lea.vmem [#allocation5], %s324_s6 }
  0x4e   : > { %485 = dma.done.wait (%p735_p3), %s167_s3, 128  }
  0x4f   : > { %487 = vsyncadd (%p735_p3), %s167_s3, 4294967168  ;;  %v195_v0 = vld [vmem:[%s161_s30] sm:$0xff]  ;;  %v196_v1 = vld [vmem:[%s170_s7] sm:$0xff]  ;;  %s194_s20 = scalar_lea.vmem [#allocation7], %s672_s5  ;;  %s326_s14 = sshll.u32 %s547_s13, 4 }
  0x50   : > { %v197_v2 = vsub.f32 %v195_v0, %v196_v1  ;;  %s227_s29 = sshll.u32 %s194_s20, 4  ;;  %s225_s16 = scalar_lea.hbm %s723_s2, %s326_s14  ;;  %s228_s29 = int_to_ptr.vmem [resolvable:$true] %s227_s29 }
  0x51   : > { %s215_s17 = scalar_lea.sflag [#allocation4], %s672_s5  ;;  %s438_s24 = scalar_lea.vmem %s228_s29, 16 }
  0x52   : > { %v198_v3 = vmul.f32 %v197_v2, %v197_v2  ;;  %p439_p6 = scmp.ne.s32.totalorder %s228_s29, %s438_s24  ;;  %p736_p13 = scmp.ne.s32.totalorder %s728_s21, 0 }
  0x53   : > { %s510_s19 = smov [#allocation7]  }
  0x54   : > { %v199_v4 = vadd.f32 1.0000001e-06, %v198_v3  ;;  %p440_p7 = pnand %p439_p6, %p736_p13  ;;  %s442_s25 = sshll.u32 %s510_s19, 4  ;;  %s443_s25 = int_to_ptr.vmem [resolvable:$false] %s442_s25 }
  0x55   : > { %s444_s23 = scalar_lea.vmem %s443_s25, 32  ;;  %p445_p10 = scmp.lt.s32.totalorder %s228_s29, %s443_s25 }
  0x56   : > { %380 = vrsqrt.f32 %v199_v4  ;;  %vm202_vm0 = vcmp.eq.f32.partialorder %v199_v4, inf  ;;  %v205_v6 = vand.u32 2147483648, %v199_v4  ;;  %vm204_vm1 = vcmp.eq.f32.partialorder %v199_v4, 0.0  ;;  %p441_p8 = pneg %p440_p7  ;;  %p446_p2 = scmp.lt.s32.totalorder %s444_s23, %s438_s24 }
  0x58   : > { %p447_p4 = por %p446_p2, %p445_p10 }
  0x5a   : > { %p448_p5 = pnand %p447_p4, %p441_p8 }
  0x63   : > { %v381_v5 = vpop.eup %380 }
  0x64   : > { %v201_v7 = vmul.f32 %v381_v5, %v199_v4 }
  0x66   : > { %v203_v8 = vsel %vm202_vm0, %v199_v4, %v201_v7 }
  0x67   : > { %v206_v9 = vsel %vm204_vm1, %v205_v6, %v203_v8 }
  0x68   : > { %v207_v10 = vrot.slane %v206_v9, 4 }
  0x6a   : > { %v208_v11 = vadd.f32 %v207_v10, %v206_v9 }
  0x6c   : > { %v209_v12 = vrot.slane %v208_v11, 2 }
  0x6e   : > { %v210_v13 = vadd.f32 %v209_v12, %v208_v11 }
  0x70   : > { %v211_v14 = vrot.slane %v210_v13, 1 }
  0x72   : > { %v212_v15 = vadd.f32 %v211_v14, %v210_v13 }
  0x74   : > { %213 = vst [vmem:[%s194_s20] sm:$0x1] %v212_v15 }
  0x75   : > { %451 = shalt.err (!%p448_p5)
}
  0x76   : > { %s452_s13 = scalar_lea.hbm %s225_s16, 16  ;;  %s456_s5 = scalar_lea.hbm %s723_s2, 32 }
  0x77   : > { %p453_p9 = scmp.ne.s32.totalorder %s225_s16, %s452_s13  ;;  %p457_p12 = scmp.lt.s32.totalorder %s225_s16, %s723_s2 }
  0x78   : > { %p458_p1 = scmp.lt.s32.totalorder %s456_s5, %s452_s13 }
  0x79   : > { %p454_p0 = pnand %p453_p9, %p736_p13 }
  0x7a   : > { %p459_p3 = por %p458_p1, %p457_p12 }
  0x7b   : > { %p455_p11 = pneg %p454_p0 }
  0x7d   : > { %p460_p6 = pnand %p459_p3, %p455_p11 }
  0x7f   : > { %463 = shalt.err (!%p460_p6)
}
  0x80   : > { %333 = dma.vmem_to_hbm [thread:$0]  (%p736_p13), %s228_s29, 16, %s225_s16, %s215_s17  }
  0x81 PF: > { %s239_s30 = sand.u32 1, %s494_s9   ;;  %p737_p7 = scmp.ne.s32.totalorder %s729_s22, 0 }
  0x82   : > { %p738_p8 = scmp.ge.s32.totalorder %s506_s12, 2  ;;  %s240_s3 = scalar_lea.sflag [#allocation4], %s239_s30 }
  0x84   : > { %p343_p10 = pnand %p738_p8, %p737_p7 }
  0x86   : > { %p344_p2 = pneg %p343_p10 }
  0x88   : > { %489 = dma.done.wait (%p344_p2), %s240_s3, 16  }
  0x89   : > { %491 = vsyncadd (%p344_p2), %s240_s3, 4294967280  ;;  %p18_p4 = scmp.ge.s32.totalorder %s551_s15, 4   ;;  %s739_s9 = smov %s498_s10 }
  0x8a   : > { %s740_s10 = smov %s502_s11  ;;  %s741_s11 = smov %s563_s18 }
  0x8b   : > { %s742_s12 = smov %s551_s15  ;;  %20 = sbr.rel (!%p18_p4) target bundleno = 7 (0x7), region = 86 }
  0x90   :  { %244 = vsyncpa [#allocation3], 1 }
  0x91   :  { %246 = vsyncpa [#allocation3 + $0x1], 1 }
  0x92   :  { %247 = vsyncpa [#allocation6], 1 }
  0x93   :  { %249 = vsyncpa [#allocation6 + $0x1], 1 }
  0x94   :  { %250 = vsyncpa [#allocation4], 1 }
  0x95   :  { %252 = vsyncpa [#allocation4 + $0x1], 1 }

</bundles_post_ra>
